<compile_context>
chip_gen: v5e
topology: v5e:2x2
jax: 0.10.0
libtpu: 0.0.40
codegen_flags: <defaults>
</compile_context>

<pallas_src>
import functools

import jax
import jax.numpy as jnp
import numpy as np
from jax import lax
from jax.experimental import pallas as pl
from jax.experimental.pallas import tpu as pltpu

# Double-buffered x working-set budget (bytes).  Conservative so the default
# tiles fit v5e's 16 MiB scoped-VMEM default; v6e/v7x have more headroom.
_VMEM_X_BUDGET = 10 * 1024 * 1024


def _round_up(a: int, m: int) -> int:
    return ((a + m - 1) // m) * m


def _logreg_kernel(x_ref, w_ref, b_ref, o_ref, *, f_valid, tk, single_k):
    # x_ref: (TB, TK) VMEM block (streams over batch/K)
    # w_ref: (nk, 1, TK) VMEM, full array, resident (constant block index)
    # b_ref: (1, 1) f32 SMEM scalar
    # o_ref: (TB, 1) f32 output block, resident across the K axis
    k = pl.program_id(1)

    w_blk = w_ref[0] if single_k else w_ref[k]            # (1, TK) lane-dense
    prod = x_ref[...].astype(jnp.float32) * w_blk          # VPU, f32

    if (not single_k) and (f_valid % tk != 0):
        # Mask the ragged tail of the last K tile (x block read past F is
        # unspecified data; select it away before reducing).
        col = lax.broadcasted_iota(jnp.int32, prod.shape, 1)
        prod = jnp.where(col < (f_valid - k * tk), prod, 0.0)

    psum = jnp.sum(prod, axis=-1, keepdims=True)            # XLU lane reduce -> (TB, 1)

    if single_k:
        # One fused mul-reduce-bias-sigmoid; no accumulator, no init/finalize.
        o_ref[...] = jax.nn.sigmoid(psum + b_ref[0, 0]).astype(o_ref.dtype)
    else:
        @pl.when(k == 0)
        def _():
            o_ref[...] = psum

        @pl.when(k > 0)
        def _():
            o_ref[...] += psum

        @pl.when(k == pl.num_programs(1) - 1)
        def _():
            o_ref[...] = jax.nn.sigmoid(o_ref[...] + b_ref[0, 0]).astype(o_ref.dtype)


def logistic_regression(x, w, b, *, tb: int = 1024, tk: int = 2048):
    """y = sigmoid(x @ w + b).  x: (B, F); w: (F, 1)/(1, F)/(F,); b: scalar -> (B, 1) f32."""
    x = jnp.asarray(x)
    B, F = x.shape
    w_flat = jnp.asarray(w, jnp.float32).reshape(-1)
    assert w_flat.shape[0] == F, (w_flat.shape, F)
    b2d = jnp.asarray(b, jnp.float32).reshape(1, 1)

    itemsize = jnp.dtype(x.dtype).itemsize

    # ---- K (feature) tiling: single full tile when it fits, else 128-aligned tiles.
    if F <= tk:
        TK, single_k = F, True
    else:
        TK = max(128, (tk // 128) * 128)
        single_k = TK >= F
        if single_k:
            TK = F
    nk = 1 if single_k else pl.cdiv(F, TK)
    F_pad = TK * nk

    # ---- Batch tiling under the VMEM budget; >= 2 tiles when possible so both
    #      v7x TensorCores get work on the "parallel" batch axis.
    max_tb_vmem = max(8, (_VMEM_X_BUDGET // (2 * TK * itemsize)) // 8 * 8)
    tb_cap = max(8, min(tb, max_tb_vmem) // 8 * 8)
    if B <= tb_cap:
        TB = min(B, _round_up(pl.cdiv(B, 2), 8)) if B >= 16 else B
    else:
        TB = tb_cap
    nb = pl.cdiv(B, TB)

    # ---- w: lane-dense, resident, tiled as (nk, 1, TK).  Padding w is F floats
    #      (negligible); x is never padded.
    w_pad = jnp.pad(w_flat, (0, F_pad - F)) if F_pad != F else w_flat
    w_tiles = w_pad.reshape(nk, 1, TK)

    cost = pl.CostEstimate(
        flops=2 * B * F,
        transcendentals=B,
        bytes_accessed=itemsize * B * F + 4 * F_pad + 4 * B,
    )

    kernel = functools.partial(_logreg_kernel, f_valid=F, tk=TK, single_k=single_k)

    return pl.pallas_call(
        kernel,
        out_shape=jax.ShapeDtypeStruct((B, 1), jnp.float32),
        grid_spec=pltpu.PrefetchScalarGridSpec(
            num_scalar_prefetch=0,
            grid=(nb, nk),                                        # reduction axis last
            in_specs=[
                pl.BlockSpec((TB, TK), lambda i, k: (i, k)),       # x streams
                pl.BlockSpec((nk, 1, TK), lambda i, k: (0, 0, 0)),  # w resident
                pl.BlockSpec(memory_space=pltpu.MemorySpace.SMEM),  # bias scalar
            ],
            out_specs=pl.BlockSpec((TB, 1), lambda i, k: (i, 0)),   # resident across k
        ),
        compiler_params=pltpu.CompilerParams(
            dimension_semantics=("parallel", "arbitrary"),
        ),
        cost_estimate=cost,
    )(x, w_tiles, b2d)


if __name__ == "__main__":
    key = jax.random.PRNGKey(0)
    keys = jax.random.split(key, 9)

    # ---- 1) small shape matching the PyTorch module (single tile, fused path) ----
    batch, n_features = 8, 32
    bound = 1.0 / np.sqrt(n_features)
    w1 = jax.random.uniform(keys[0], (n_features, 1), jnp.float32, -bound, bound)
    b1 = jax.random.uniform(keys[1], (), jnp.float32, -bound, bound)
    x1 = jax.random.normal(keys[2], (batch, n_features), jnp.float32)

    y1 = logistic_regression(x1, w1, b1)
    jax.block_until_ready(y1)
    y1_ref = jax.nn.sigmoid(x1 @ w1 + b1)
    assert y1.shape == (batch, 1)
    assert jnp.allclose(y1, y1_ref, atol=1e-5), "mismatch vs reference (small)"

    # ---- 2) single-K fused path with two batch tiles (TK=F, TB=256, nb=2) ----
    B2, F2 = 512, 784
    bound2 = 1.0 / np.sqrt(F2)
    w2 = jax.random.uniform(keys[3], (F2, 1), jnp.float32, -bound2, bound2)
    b2 = jax.random.uniform(keys[4], (), jnp.float32, -bound2, bound2)
    x2 = jax.random.normal(keys[5], (B2, F2), jnp.float32)

    y2 = logistic_regression(x2, w2, b2)
    jax.block_until_ready(y2)
    z2 = np.asarray(x2, np.float64) @ np.asarray(w2, np.float64) + float(b2)
    y2_ref = 1.0 / (1.0 + np.exp(-z2))
    np.testing.assert_allclose(np.asarray(y2, np.float64), y2_ref, atol=2e-5)

    # ---- 3) tiled-K path with ragged K tail (masked) and ragged batch tile ----
    B3, F3 = 300, 600            # tb=128 -> 3 batch tiles (last ragged);
    bound3 = 1.0 / np.sqrt(F3)   # tk=256 -> 3 K tiles (last 88 lanes masked)
    w3 = jax.random.uniform(keys[6], (F3, 1), jnp.float32, -bound3, bound3)
    b3 = jax.random.uniform(keys[7], (), jnp.float32, -bound3, bound3)
    x3 = jax.random.normal(keys[8], (B3, F3), jnp.float32)

    y3 = logistic_regression(x3, w3, b3, tb=128, tk=256)
    jax.block_until_ready(y3)
    z3 = np.asarray(x3, np.float64) @ np.asarray(w3, np.float64) + float(b3)
    y3_ref = 1.0 / (1.0 + np.exp(-z3))
    np.testing.assert_allclose(np.asarray(y3, np.float64), y3_ref, atol=2e-5)

    print("KERNEL_OK")
</pallas_src>

<mosaic_0001>
module attributes {stable_mosaic.version = 11 : i64} {
  func.func @_logreg_kernel(%arg0: i32, %arg1: i32, %arg2: memref<8x32xf32, #tpu.memory_space<vmem>>, %arg3: memref<1x1x32xf32, #tpu.memory_space<vmem>>, %arg4: memref<1x1xf32, #tpu.memory_space<smem>>, %arg5: memref<8x1xf32, #tpu.memory_space<vmem>>) attributes {dimension_semantics = [#tpu.dimension_semantics<parallel>, #tpu.dimension_semantics<arbitrary>], iteration_bounds = array<i64: 1, 1>, scalar_prefetch = 0 : i64, scratch_operands = 0 : i64, tpu.core_type = #tpu.core_type<tc>, window_params = [{transform_indices = @transform_0, window_bounds = array<i64: 8, 32>}, {pipeline_mode = #tpu.pipeline_mode<synchronous>, transform_indices = @transform_1, window_bounds = array<i64: 1, 1, 32>}, {transform_indices = @transform_2, window_bounds = array<i64: 1, 1>}, {transform_indices = @transform_3, window_bounds = array<i64: 8, 1>}]} {
    %c0 = arith.constant 0 : index
    %c0_0 = arith.constant 0 : index
    %c0_1 = arith.constant 0 : index
    %0 = vector.load %arg3[%c0, %c0_0, %c0_1] : memref<1x1x32xf32, #tpu.memory_space<vmem>>, vector<1x1x32xf32>
    %1 = vector.shape_cast %0 : vector<1x1x32xf32> to vector<1x32xf32>
    %c0_2 = arith.constant 0 : index
    %c0_3 = arith.constant 0 : index
    %2 = vector.load %arg2[%c0_2, %c0_3] : memref<8x32xf32, #tpu.memory_space<vmem>>, vector<8x32xf32>
    %3 = vector.broadcast %1 : vector<1x32xf32> to vector<8x32xf32>
    %4 = arith.mulf %2, %3 : vector<8x32xf32>
    %cst = arith.constant dense<0.000000e+00> : vector<8xf32>
    %5 = vector.multi_reduction <add>, %4, %cst [1] : vector<8x32xf32> to vector<8xf32>
    %6 = vector.shape_cast %5 : vector<8xf32> to vector<8x1xf32>
    %c0_4 = arith.constant 0 : index
    %c0_5 = arith.constant 0 : index
    %7 = memref.load %arg4[%c0_4, %c0_5] : memref<1x1xf32, #tpu.memory_space<smem>>
    %8 = vector.broadcast %7 : f32 to vector<8x1xf32>
    %9 = arith.addf %6, %8 : vector<8x1xf32>
    %10 = arith.negf %9 : vector<8x1xf32>
    %11 = math.exp %10 : vector<8x1xf32>
    %cst_6 = arith.constant 1.000000e+00 : f32
    %12 = vector.broadcast %cst_6 : f32 to vector<8x1xf32>
    %13 = arith.addf %12, %11 : vector<8x1xf32>
    %14 = arith.divf %12, %13 : vector<8x1xf32>
    %c0_7 = arith.constant 0 : index
    %c0_8 = arith.constant 0 : index
    %15 = vector.load %arg5[%c0_7, %c0_8] : memref<8x1xf32, #tpu.memory_space<vmem>>, vector<8x1xf32>
    tpu.vector_store %arg5[%c0_7, %c0_8], %14 {strides = array<i32>} : memref<8x1xf32, #tpu.memory_space<vmem>>, vector<8x1xf32>,
    return
  }
  func.func @transform_0(%arg0: i32, %arg1: i32) -> (i32, i32) {
    %c0_i32 = arith.constant 0 : i32
    return %arg0, %arg1 : i32, i32
  }
  func.func @transform_1(%arg0: i32, %arg1: i32) -> (i32, i32, i32) {
    %c0_i32 = arith.constant 0 : i32
    %c0_i32_0 = arith.constant 0 : i32
    %c0_i32_1 = arith.constant 0 : i32
    %c0_i32_2 = arith.constant 0 : i32
    return %c0_i32, %c0_i32_0, %c0_i32_1 : i32, i32, i32
  }
  func.func @transform_2(%arg0: i32, %arg1: i32) -> (i32, i32) {
    %c0_i32 = arith.constant 0 : i32
    %c0_i32_0 = arith.constant 0 : i32
    %c0_i32_1 = arith.constant 0 : i32
    return %c0_i32, %c0_i32_0 : i32, i32
  }
  func.func @transform_3(%arg0: i32, %arg1: i32) -> (i32, i32) {
    %c0_i32 = arith.constant 0 : i32
    %c0_i32_0 = arith.constant 0 : i32
    return %arg0, %c0_i32 : i32, i32
  }
}

</mosaic_0001>

<bundles_post_ra>
// kernel: tpu_custom_call.1
= control target key start
LH: loop header
LB: loop body
LE: loop exit
PB: predicated region body
PF: predicated region fallthrough
CT: control target
= control target key end

     0   :  { %9 = vsyncpa [#allocation4], 0  ;;  %s101_s15 = smov [#allocation3]   ;;  %s134_s0 = inlined_call_operand.hbm [shape: f32[8,32], index: 0, kind: input, shape index: {}]   ;;  %s135_s1 = inlined_call_operand.vmem [shape: f32[1,1,32], index: 1, kind: input, shape index: {}]   ;;  %s136_s2 = inlined_call_operand.<no memory space> [shape: f32[1,1], index: 2, kind: input, shape index: {}]   ;;  %s137_s3 = inlined_call_operand.vmem [shape: f32[8,1], index: 3, kind: output, shape index: {}]  }
   0x1   :  { %s15_s14 = sshll.u32 %s134_s0, 4  ;;  %s17_s16 = sshll.u32 %s101_s15, 4  ;;  %s16_s14 = int_to_ptr.hbm [resolvable:$true] %s15_s14  ;;  %s18_s16 = int_to_ptr.vmem [resolvable:$true] %s17_s16 }
   0x2   :  { %20 = dma.hbm_to_vmem [thread:$0]  %s16_s14, 128, %s18_s16, [#allocation4]  }
   0x3   :  { %99 = dma.done.wait [#allocation4], 128  }
   0x4   :  { %100 = vsyncadd [#allocation4], 4294967168  ;;  %v30_v0 = vld [vmem:[#allocation3] sm:$0xff]  ;;  %vm35_vm0 = vcmask 261120   ;;  %v40_v4 = vstv %s136_s2  ;;  %vm61_vm4 = vcmask 7168  }
   0x5   :  { %v70_v1 = vld [vmem:[%s135_s1] ss:$0 sm:$0xff] }
   0x6   :  { %v34_v2 = vmul.f32 %v70_v1, %v30_v0 }
   0x8   :  { %v36_v3 = vsel %vm35_vm0, %v34_v2, 0.0 }
   0x9   :  { %37 = vadd.xlane.f32.xlu0 %v36_v3 }
  0x7c   :  { %v38_v5 = vpop.xlane.xlu0 %37 }
  0x7d   :  { %v41_v6 = vadd.f32 %v40_v4, %v38_v5 }
  0x7f   :  { %v68_v7 = vmul.f32 -1.442695, %v41_v6 }
  0x81   :  { %71 = vpow2.f32 %v68_v7 }
  0x87   :  { %v72_v8 = vpop.eup %71 }
  0x88   :  { %v45_v9 = vadd.f32 1.0, %v72_v8 }
  0x8a   :  { %73 = vrcp.f32 %v45_v9  ;;  %v57_v13 = vand.u32 2147483648, %v45_v9  ;;  %v55_v15 = vand.u32 2147483647, %v45_v9  ;;  %vm51_vm2 = vweird.f32 %v45_v9 }
  0x8c   :  { %v58_v17 = vor.u32 1.1754944e-38, %v57_v13  ;;  %vm56_vm5 = vcmp.eq.f32.partialorder %v55_v15, 8.507059e+37 }
  0x90   :  { %v74_v10 = vpop.eup %73 }
  0x91   :  { %v47_v11 = vmul.f32 %v74_v10, %v45_v9  ;;  %vm52_vm1 = vweird.f32 %v74_v10 }
  0x92   :  { %vm53_vm3 = vmor %vm51_vm2, %vm52_vm1 }
  0x93   :  { %v48_v12 = vsub.f32 1.0, %v47_v11 }
  0x95   :  { %v49_v14 = vmul.f32 %v74_v10, %v48_v12 }
  0x97   :  { %v50_v16 = vadd.f32 %v74_v10, %v49_v14 }
  0x99   :  { %v54_v18 = vsel %vm53_vm3, %v74_v10, %v50_v16 }
  0x9a   :  { %v59_v19 = vsel %vm56_vm5, %v58_v17, %v54_v18 }
  0x9b   :  { %62 = vst.msk [vmem:[%s137_s3] sm:$0xff] %vm61_vm4, %v59_v19 }
  0x9c   :  { %67 = vsyncpa [#allocation4], 1 }

</bundles_post_ra>
